<compile_context>
chip_gen: v5e
topology: v5e:2x2
jax: 0.10.0
libtpu: 0.0.40
codegen_flags: <defaults>
</compile_context>

<pallas_src>
import functools

import jax
import jax.numpy as jnp
from jax.experimental import pallas as pl
from jax.experimental.pallas import tpu as pltpu


# ---------------------------------------------------------------------------
# Kernel helpers
# ---------------------------------------------------------------------------
def _tile_heads(t, h):
    """Repeat a (TS, d) table h times along lanes -> (TS, h*d)."""
    if h == 1:
        return t
    out = None
    cur, n = t, h
    while n > 0:
        if n & 1:
            out = cur if out is None else jnp.concatenate([out, cur], axis=-1)
        n >>= 1
        if n:
            cur = jnp.concatenate([cur, cur], axis=-1)
    return out


# ---------------------------------------------------------------------------
# Kernel
# ---------------------------------------------------------------------------
def _rope_kernel(x_ref, cos_ref, sin_ref, o_ref, *, h, d):
    """One (TB, TS, h*d) block of rotary embedding.

    out = x * cos + rot(x) * sin_signed, where for head-local lane i < d/2 the
    rotated operand is x[lane + d/2] (sin_signed = -sin there) and for
    i >= d/2 it is x[lane - d/2] (sin_signed = +sin there).
    """
    d2 = d // 2
    tb, ts, hd = x_ref.shape

    xf = x_ref[...].astype(jnp.float32)                     # (TB, TS, h*d)

    # Broadcast the compact (TS, d) f32 tables across heads -> (TS, h*d).
    cos = _tile_heads(cos_ref[...], h)
    sin = _tile_heads(sin_ref[...], h)

    # Deterministic lane shifts by +/- d/2 (slice + concat, no roll-direction
    # convention).  The head-boundary wrap-around lanes are never selected.
    x_plus = jnp.concatenate([xf[..., d2:], xf[..., :d2]], axis=-1)         # x[lane + d/2]
    x_minus = jnp.concatenate([xf[..., hd - d2:], xf[..., :hd - d2]], axis=-1)  # x[lane - d/2]

    lane = jax.lax.broadcasted_iota(jnp.int32, (ts, hd), 1)
    first_half = (lane % d) < d2                             # head-local first half
    rot = jnp.where(first_half[None, :, :], x_plus, x_minus)

    out = xf * cos[None, :, :] + rot * sin[None, :, :]
    o_ref[...] = out.astype(o_ref.dtype)


# ---------------------------------------------------------------------------
# Cached angle tables (compact (s, d), built once per (s, d, base))
# ---------------------------------------------------------------------------
@functools.lru_cache(maxsize=16)
def _angle_tables(s, d, base):
    theta = 1.0 / (float(base) ** (jnp.arange(0, d, 2, dtype=jnp.float32) / d))  # (d/2,)
    seq = jnp.arange(s, dtype=jnp.float32)
    idx_theta = seq[:, None] * theta[None, :]                                    # (s, d/2)
    cos_h = jnp.cos(idx_theta)
    sin_h = jnp.sin(idx_theta)
    cos_d = jnp.concatenate([cos_h, cos_h], axis=1)           # cos(idx_theta2)   (s, d)
    sin_signed = jnp.concatenate([-sin_h, sin_h], axis=1)     # sign-folded sin   (s, d)
    return cos_d, sin_signed


# ---------------------------------------------------------------------------
# Tiling / VMEM budget
# ---------------------------------------------------------------------------
def _vmem_limits():
    """Return (vmem_limit_bytes for CompilerParams, pipeline budget bytes)."""
    cap = 64 * 1024 * 1024                    # conservative default (v7x per-TC VMEM)
    get_info = getattr(pltpu, "get_tpu_info", None)
    if get_info is not None:
        try:
            cap = int(getattr(get_info(), "vmem_capacity_bytes", cap)) or cap
        except Exception:
            pass
    limit = max(16 * 1024 * 1024, min(cap * 3 // 4, 96 * 1024 * 1024))
    budget = int(limit * 0.6)
    return limit, budget


def _choose_tiles(b, s, hd, d, x_bytes, out_bytes, budget_bytes):
    """Pick (batch tile TB, sequence tile TS)."""
    quantum = {1: 32, 2: 16, 4: 8}.get(x_bytes, 8)            # dtype-aware sublane quantum

    def step_bytes(tb, ts):
        io = 2 * tb * ts * hd * (x_bytes + out_bytes)         # double-buffered x + out blocks
        mid = 4 * tb * ts * hd * 4                            # f32 in-kernel temporaries
        tabs = 2 * 2 * ts * d * 4                             # cos + sin blocks, double-buffered
        return io + mid + tabs

    # Sequence tile: largest sublane-aligned divisor of s (or s itself) that fits.
    if s <= quantum:
        ts = s
    else:
        cands = sorted({t for t in range(quantum, s + 1, quantum) if s % t == 0} | {s})
        fitting = [t for t in cands if step_bytes(1, t) <= budget_bytes]
        if fitting:
            ts = max(fitting)
        else:
            ts = quantum
            t = 2 * quantum
            while t < s and step_bytes(1, t) <= budget_bytes:
                ts = t
                t += quantum

    # Batch tile: largest divisor of b that still fits (bigger DMAs for short s).
    tb = 1
    for cand in range(1, b + 1):
        if b % cand == 0 and step_bytes(cand, ts) <= budget_bytes:
            tb = cand

    # v7x has 2 TensorCores per chip: keep >= 2 grid blocks whenever possible.
    if pl.cdiv(s, ts) * pl.cdiv(b, tb) < 2:
        if b > 1:
            tb = max(1, (b + 1) // 2)
        else:
            divs = [t for t in range(quantum, s, quantum) if s % t == 0]
            if divs:
                ts = max(divs)
    return tb, ts


# ---------------------------------------------------------------------------
# Wrapper
# ---------------------------------------------------------------------------
def rot_posi_emb(x, base: int = 10000):
    """Pallas TPU implementation of rotPosiEmb.forward.  x: (b, s, h, d)."""
    b, s, h, d = x.shape
    assert d % 2 == 0 and d >= 2, "head dim must be even"
    hd = h * d

    out_dtype = jnp.promote_types(x.dtype, jnp.float32)       # reference promotes by f32 cos/sin
    cos_t, sin_t = _angle_tables(int(s), int(d), int(base))   # (s, d) f32, cached

    x_bytes = jnp.dtype(x.dtype).itemsize
    out_bytes = jnp.dtype(out_dtype).itemsize
    vmem_limit, budget = _vmem_limits()
    tb, ts = _choose_tiles(b, s, hd, d, x_bytes, out_bytes, budget)
    grid = (pl.cdiv(s, ts), pl.cdiv(b, tb))                   # s-tiles OUTER, batch INNER

    kernel = functools.partial(_rope_kernel, h=h, d=d)

    flops = 6 * b * s * hd                                    # mul/add/select per element
    bytes_accessed = b * s * hd * (x_bytes + out_bytes) + 2 * s * d * 4

    out = pl.pallas_call(
        kernel,
        out_shape=jax.ShapeDtypeStruct((b, s, hd), out_dtype),
        grid_spec=pltpu.PrefetchScalarGridSpec(
            num_scalar_prefetch=0,
            grid=grid,
            in_specs=[
                pl.BlockSpec((tb, ts, hd), lambda si, bi: (bi, si, 0)),
                # Compact tables: block index unchanged across inner batch steps,
                # so they are not re-DMA'd per batch tile.
                pl.BlockSpec((ts, d), lambda si, bi: (si, 0)),
                pl.BlockSpec((ts, d), lambda si, bi: (si, 0)),
            ],
            out_specs=pl.BlockSpec((tb, ts, hd), lambda si, bi: (bi, si, 0)),
        ),
        compiler_params=pltpu.CompilerParams(
            dimension_semantics=("parallel", "parallel"),
            vmem_limit_bytes=vmem_limit,
        ),
        cost_estimate=pl.CostEstimate(
            flops=flops, transcendentals=0, bytes_accessed=bytes_accessed),
    )(x.reshape(b, s, hd), cos_t, sin_t)

    return out.reshape(b, s, h, d)


# ---------------------------------------------------------------------------
# Pure-JAX reference (mirrors the PyTorch module exactly)
# ---------------------------------------------------------------------------
def _reference(x, base: int = 10000):
    b, s, h, d = x.shape
    d2 = d // 2
    theta = 1.0 / (base ** (jnp.arange(0, d, 2, dtype=jnp.float32) / d))
    seq_idx = jnp.arange(s, dtype=jnp.float32)
    idx_theta = jnp.einsum("n,d->nd", seq_idx, theta)
    idx_theta2 = jnp.concatenate([idx_theta, idx_theta], axis=1)
    neg_half = jnp.concatenate([-x[..., d2:], x[..., :d2]], axis=-1)
    return (x * jnp.cos(idx_theta2)[None, :, None, :]
            + neg_half * jnp.sin(idx_theta2)[None, :, None, :])


if __name__ == "__main__":
    key = jax.random.PRNGKey(0)
    b, s, h, d = 2, 8, 4, 32
    x = jax.random.normal(key, (b, s, h, d), dtype=jnp.float32)

    out = jax.block_until_ready(rot_posi_emb(x))
    ref = _reference(x)

    assert out.shape == (b, s, h, d)
    max_err = float(jnp.max(jnp.abs(out - ref)))
    assert jnp.allclose(out, ref, atol=1e-5, rtol=1e-5), f"max abs err = {max_err}"
    print("KERNEL_OK")
</pallas_src>

<mosaic_0001>
module attributes {stable_mosaic.version = 11 : i64} {
  func.func @_rope_kernel(%arg0: i32, %arg1: i32, %arg2: memref<1x8x128xf32, #tpu.memory_space<vmem>>, %arg3: memref<8x32xf32, #tpu.memory_space<vmem>>, %arg4: memref<8x32xf32, #tpu.memory_space<vmem>>, %arg5: memref<1x8x128xf32, #tpu.memory_space<vmem>>) attributes {dimension_semantics = [#tpu.dimension_semantics<parallel>, #tpu.dimension_semantics<parallel>], iteration_bounds = array<i64: 1, 2>, scalar_prefetch = 0 : i64, scratch_operands = 0 : i64, tpu.core_type = #tpu.core_type<tc>, window_params = [{transform_indices = @transform_0, window_bounds = array<i64: 1, 8, 128>}, {transform_indices = @transform_1, window_bounds = array<i64: 8, 32>}, {transform_indices = @transform_2, window_bounds = array<i64: 8, 32>}, {transform_indices = @transform_3, window_bounds = array<i64: 1, 8, 128>}]} {
    %c0 = arith.constant 0 : index
    %c0_0 = arith.constant 0 : index
    %c0_1 = arith.constant 0 : index
    %0 = vector.load %arg2[%c0, %c0_0, %c0_1] : memref<1x8x128xf32, #tpu.memory_space<vmem>>, vector<1x8x128xf32>
    %c0_2 = arith.constant 0 : index
    %c0_3 = arith.constant 0 : index
    %1 = vector.load %arg3[%c0_2, %c0_3] : memref<8x32xf32, #tpu.memory_space<vmem>>, vector<8x32xf32>
    %2 = tpu.concatenate %1, %1 in 1 : vector<8x32xf32>, vector<8x32xf32> -> vector<8x64xf32>
    %3 = tpu.concatenate %2, %2 in 1 : vector<8x64xf32>, vector<8x64xf32> -> vector<8x128xf32>
    %c0_4 = arith.constant 0 : index
    %c0_5 = arith.constant 0 : index
    %4 = vector.load %arg4[%c0_4, %c0_5] : memref<8x32xf32, #tpu.memory_space<vmem>>, vector<8x32xf32>
    %5 = tpu.concatenate %4, %4 in 1 : vector<8x32xf32>, vector<8x32xf32> -> vector<8x64xf32>
    %6 = tpu.concatenate %5, %5 in 1 : vector<8x64xf32>, vector<8x64xf32> -> vector<8x128xf32>
    %7 = vector.extract_strided_slice %0 {offsets = [0, 0, 16], sizes = [1, 8, 112], strides = [1, 1, 1]} : vector<1x8x128xf32> to vector<1x8x112xf32>
    %8 = vector.extract_strided_slice %0 {offsets = [0, 0, 0], sizes = [1, 8, 16], strides = [1, 1, 1]} : vector<1x8x128xf32> to vector<1x8x16xf32>
    %9 = tpu.concatenate %7, %8 in 2 : vector<1x8x112xf32>, vector<1x8x16xf32> -> vector<1x8x128xf32>
    %10 = vector.extract_strided_slice %0 {offsets = [0, 0, 112], sizes = [1, 8, 16], strides = [1, 1, 1]} : vector<1x8x128xf32> to vector<1x8x16xf32>
    %11 = vector.extract_strided_slice %0 {offsets = [0, 0, 0], sizes = [1, 8, 112], strides = [1, 1, 1]} : vector<1x8x128xf32> to vector<1x8x112xf32>
    %12 = tpu.concatenate %10, %11 in 2 : vector<1x8x16xf32>, vector<1x8x112xf32> -> vector<1x8x128xf32>
    %13 = tpu.iota {dimensions = array<i32: 1>} : vector<8x128xi32>
    %c32_i32 = arith.constant 32 : i32
    %c0_i32 = arith.constant 0 : i32
    %14 = arith.cmpi eq, %c32_i32, %c0_i32 : i32
    %c1_i32 = arith.constant 1 : i32
    %15 = arith.select %14, %c1_i32, %c32_i32 : i32
    %16 = vector.broadcast %15 : i32 to vector<8x128xi32>
    %17 = arith.remsi %13, %16 : vector<8x128xi32>
    %c0_i32_6 = arith.constant 0 : i32
    %18 = vector.broadcast %c0_i32_6 : i32 to vector<8x128xi32>
    %19 = arith.cmpi ne, %17, %18 : vector<8x128xi32>
    %c0_i32_7 = arith.constant 0 : i32
    %20 = vector.broadcast %c0_i32_7 : i32 to vector<8x128xi32>
    %21 = arith.cmpi slt, %17, %20 : vector<8x128xi32>
    %c0_i32_8 = arith.constant 0 : i32
    %22 = arith.cmpi slt, %15, %c0_i32_8 : i32
    %23 = vector.broadcast %22 : i1 to vector<8x128xi1>
    %24 = vector.broadcast %23 : vector<8x128xi1> to vector<8x128xi1>
    %25 = arith.xori %21, %24 : vector<8x128xi1>
    %26 = arith.andi %25, %19 : vector<8x128xi1>
    %27 = vector.broadcast %15 : i32 to vector<8x128xi32>
    %28 = arith.addi %17, %27 : vector<8x128xi32>
    %29 = arith.select %26, %28, %17 : vector<8x128xi1>, vector<8x128xi32>
    %c16_i32 = arith.constant 16 : i32
    %30 = vector.broadcast %c16_i32 : i32 to vector<8x128xi32>
    %31 = arith.cmpi slt, %29, %30 : vector<8x128xi32>
    %32 = vector.shape_cast %31 : vector<8x128xi1> to vector<1x8x128xi1>
    %33 = arith.select %32, %9, %12 : vector<1x8x128xi1>, vector<1x8x128xf32>
    %34 = vector.shape_cast %3 : vector<8x128xf32> to vector<1x8x128xf32>
    %35 = arith.mulf %0, %34 : vector<1x8x128xf32>
    %36 = vector.shape_cast %6 : vector<8x128xf32> to vector<1x8x128xf32>
    %37 = arith.mulf %33, %36 : vector<1x8x128xf32>
    %38 = arith.addf %35, %37 : vector<1x8x128xf32>
    %c0_9 = arith.constant 0 : index
    %c0_10 = arith.constant 0 : index
    %c0_11 = arith.constant 0 : index
    %39 = vector.load %arg5[%c0_9, %c0_10, %c0_11] : memref<1x8x128xf32, #tpu.memory_space<vmem>>, vector<1x8x128xf32>
    tpu.vector_store %arg5[%c0_9, %c0_10, %c0_11], %38 {strides = array<i32>} : memref<1x8x128xf32, #tpu.memory_space<vmem>>, vector<1x8x128xf32>,
    return
  }
  func.func @transform_0(%arg0: i32, %arg1: i32) -> (i32, i32, i32) {
    %c0_i32 = arith.constant 0 : i32
    %c0_i32_0 = arith.constant 0 : i32
    return %arg1, %arg0, %c0_i32 : i32, i32, i32
  }
  func.func @transform_1(%arg0: i32, %arg1: i32) -> (i32, i32) {
    %c0_i32 = arith.constant 0 : i32
    %c0_i32_0 = arith.constant 0 : i32
    return %arg0, %c0_i32 : i32, i32
  }
  func.func @transform_2(%arg0: i32, %arg1: i32) -> (i32, i32) {
    %c0_i32 = arith.constant 0 : i32
    %c0_i32_0 = arith.constant 0 : i32
    return %arg0, %c0_i32 : i32, i32
  }
  func.func @transform_3(%arg0: i32, %arg1: i32) -> (i32, i32, i32) {
    %c0_i32 = arith.constant 0 : i32
    %c0_i32_0 = arith.constant 0 : i32
    return %arg1, %arg0, %c0_i32 : i32, i32, i32
  }
}

</mosaic_0001>

<bundles_post_ra>
// kernel: tpu_custom_call.1
= control target key start
LH: loop header
LB: loop body
LE: loop exit
PB: predicated region body
PF: predicated region fallthrough
CT: control target
= control target key end

     0   :  { %8 = vsyncpa [#allocation3], 0  ;;  %s874_s0 = inlined_call_operand.hbm [shape: f32[2,8,128], index: 0, kind: input, shape index: {}]   ;;  %s875_s1 = inlined_call_operand.hbm [shape: f32[8,32], index: 1, kind: input, shape index: {}]   ;;  %s876_s2 = inlined_call_operand.hbm [shape: f32[8,32], index: 2, kind: input, shape index: {}]   ;;  %s877_s3 = inlined_call_operand.hbm [shape: f32[2,8,128], index: 3, kind: output, shape index: {}]  }
   0x1   :  { %10 = vsyncpa [#allocation3 + $0x1], 0 }
   0x2   :  { %11 = vsyncpa [#allocation6], 0 }
   0x3   :  { %12 = vsyncpa [#allocation4], 0 }
   0x4   :  { %14 = vsyncpa [#allocation4 + $0x1], 0  ;;  %s728_s12 = smov 0   ;;  %s730_s13 = smov 0  }
   0x5   :  { %s732_s14 = smov 0   ;;  %s734_s15 = smov 0  }
   0x6   :  { %s736_s16 = smov 0   ;;  %s738_s17 = smov 0  }
   0x7 LB: > { %s420_s18 = sadd.s32 4294967295, %s700_s17   ;;  %s421_s19 = sadd.s32 4294967294, %s700_s17   ;;  %s700_s17 = sphi %s738_s17, %s20_s17   ;;  %s696_s16 = sphi %s736_s16, %s887_s16   ;;  %s692_s15 = sphi %s734_s15, %s886_s15   ;;  %s688_s14 = sphi %s732_s14, %s885_s14   ;;  %s684_s13 = sphi %s730_s13, %s884_s13   ;;  %s680_s12 = sphi %s728_s12, %s883_s12  }
   0x8   : > { %p54_p0 = scmp.ne.s32.totalorder %s684_s13, %s680_s12  ;;  %p762_p1 = scmp.eq.s32.totalorder %s420_s18, 0 }
   0x9   : > { %p138_p2 = scmp.eq.s32.totalorder %s421_s19, 1  ;;  %p422_p4 = scmp.ge.s32.totalorder %s700_s17, 1 }
   0xa   : > { %p768_p3 = por %p762_p1, %p54_p0  ;;  %p145_p6 = scmp.lt.s32.totalorder %s700_s17, 3 }
   0xb   : > { %p773_p5 = por %p138_p2, %p54_p0  ;;  %s159_s25 = sshll.u32 %s875_s1, 4  ;;  %s160_s25 = int_to_ptr.hbm [resolvable:$true] %s159_s25 }
   0xc   : > { %p781_p7 = pnand %p422_p4, %p145_p6  ;;  %p425_p8 = scmp.ge.s32.totalorder %s700_s17, 2 }
   0xd   : > { %s702_s27 = smov [#allocation5]   ;;  %s173_s4 = sshll.u32 %s876_s2, 4  ;;  %s174_s4 = int_to_ptr.hbm [resolvable:$true] %s173_s4 }
   0xe   : > { %p449_p9 = pneg %p781_p7  ;;  %s161_s28 = sshll.u32 %s702_s27, 4  ;;  %s162_s28 = int_to_ptr.vmem [resolvable:$true] %s161_s28 }
   0xf   : > { %s703_s5 = smov [#allocation7]   ;;  %p132_p11 = scmp.eq.s32.totalorder %s420_s18, 1 }
  0x10   : > { %p450_p10 = pnand %p449_p9, %p762_p1  ;;  %s175_s6 = sshll.u32 %s703_s5, 4  ;;  %s176_s6 = int_to_ptr.vmem [resolvable:$true] %s175_s6 }
  0x11   : > { %s29_s7 = sadd.s32 1, %s696_s16  ;;  %s41_s8 = sadd.s32 1, %s688_s14 }
  0x12   : > { %452 = dma.hbm_to_vmem [thread:$0]  (!%p450_p10), %s160_s25, 128, %s162_s28, [#allocation6]  }
  0x13   : > { %455 = dma.hbm_to_vmem [thread:$0]  (!%p450_p10), %s174_s4, 128, %s176_s6, [#allocation6]  }
  0x14   : > { %p30_p12 = scmp.ge.s32.totalorder %s29_s7, 2  ;;  %p48_p13 = scmp.ne.s32.totalorder %s688_s14, %s684_s13 }
  0x15   : > { %p49_p0 = scmp.eq.s32.totalorder %s700_s17, 0  ;;  %p466_p4 = scmp.lt.s32.totalorder %s700_s17, 2 }
  0x16   : > { %s889_s7 = smov (%p30_p12, %s29_s7), 0  ;;  %p800_p2 = por %p132_p11, %p48_p13 }
  0x17   : > { %s36_s10 = ssub.s32 %s696_s16, %s889_s7  ;;  %s186_s11 = sand.u32 1, %s688_s14  }
  0x18   : > { %p39_p6 = scmp.eq.s32.totalorder %s36_s10, 0  ;;  %p50_p9 = por %p49_p0, %p48_p13 }
  0x19   : > { %s426_s19 = sshll.u32 %s186_s11, 3  ;;  %s427_s18 = sshll.u32 %s696_s16, 3 }
  0x1a   : > { %s810_s23 = scalar_select %p39_p6, %s688_s14, %s41_s8  }
  0x1b   : > { %s195_s27 = scalar_lea.hbm %s874_s0, %s427_s18  ;;  %s190_s29 = scalar_lea.vmem [#allocation2], %s426_s19 }
  0x1c   : > { %s197_s28 = sshll.u32 %s195_s27, 4  ;;  %s199_s30 = sshll.u32 %s190_s29, 4  ;;  %s198_s28 = int_to_ptr.hbm [resolvable:$true] %s197_s28  ;;  %s200_s30 = int_to_ptr.vmem [resolvable:$true] %s199_s30 }
  0x1d   : > { %p457_p10 = pnand %p466_p4, %p50_p9  ;;  %s187_s4 = scalar_lea.sflag [#allocation3], %s186_s11 }
  0x1e   : > { %208 = sbr.rel (%p781_p7) target bundleno = 286 (0x11e), region = 32  ;;  %s820_s5 = sand.u32 (!%p781_p7), 1, %s684_s13  }
  0x1f   : > { %459 = dma.hbm_to_vmem [thread:$0]  (!%p457_p10), %s198_s28, 128, %s200_s30, %s187_s4  }
  0x20   : > { %s429_s6 = sshll.u32 (!%p781_p7), %s820_s5, 3  ;;  %s211_s8 = scalar_lea.sflag (!%p781_p7), [#allocation3], %s820_s5 }
  0x21   : > { %s214_s10 = scalar_lea.vmem (!%p781_p7), [#allocation2], %s429_s6 }
  0x23   : > { %667 = dma.done.wait (%p768_p3), %s211_s8, 128  }
  0x24   : > { %669 = vsyncadd (%p768_p3), %s211_s8, 4294967168 }
  0x25   : > { %671 = dma.done.wait (%p762_p1), [#allocation6], 256  }
  0x26   : > { %673 = vsyncadd (%p762_p1), [#allocation6], 4294967040  ;;  %v249_v0 = vld [vmem:[#allocation5] sm:$0xff]  ;;  %s704_s26 = smov 32   ;;  %v262_v1 = vld [vmem:[#allocation7] sm:$0xff]  ;;  %s705_s11 = smov 112   ;;  %v280_v7 = vlaneseq }
  0x27   : > { %251 = vrot.lane.b32.xlu0 %v249_v0, %s704_s26  ;;  %v248_v2 = vld [vmem:[%s214_s10] sm:$0xff]  ;;  %s706_s19 = smov 16   ;;  %vm254_vm0 = vcmask 261120   ;;  %s707_s21 = smov 64   ;;  %vm260_vm1 = vcmask 523264  }
  0x28   : > { %274 = vrot.lane.b32.xlu2 %v248_v2, %s705_s11  ;;  %v281_v9 = vand.u32 127, %v280_v7  ;;  %s434_s20 = sshll.u32 %s692_s15, 3  ;;  %s247_s27 = scalar_lea.vmem [#allocation8], %s429_s6 }
  0x29   : > { %s312_s25 = scalar_lea.hbm %s877_s3, %s434_s20  ;;  %s314_s28 = sshll.u32 %s247_s27, 4  ;;  %s315_s28 = int_to_ptr.vmem [resolvable:$true] %s314_s28 }
  0x2a   : > { %v286_v11 = vand.u32 31, %v281_v9  ;;  %s316_s29 = sshll.u32 %s312_s25, 4  ;;  %s301_s15 = scalar_lea.sflag [#allocation4], %s820_s5  ;;  %s317_s29 = int_to_ptr.hbm [resolvable:$true] %s316_s29 }
  0x2b   : > { %s628_s30 = sshra.s32 %s317_s29, 4  ;;  %s634_s6 = scalar_lea.hbm %s877_s3, 16  ;;  %s629_s30 = int_to_ptr.hbm [resolvable:$true] %s628_s30 }
  0x2c   : > { %vm294_vm2 = vcmp.lt.s32.totalorder %v286_v11, 16  ;;  %s630_s4 = scalar_lea.hbm %s629_s30, 8  ;;  %p635_p11 = scmp.lt.s32.totalorder %s629_s30, %s877_s3 }
  0x2d   : > { %p631_p1 = scmp.ne.s32.totalorder %s629_s30, %s630_s4  ;;  %p636_p12 = scmp.lt.s32.totalorder %s634_s6, %s630_s4 }
  0x2f   : > { %264 = vrot.lane.b32.xlu0 %v262_v1, %s704_s26  ;;  %p632_p3 = pnand %p631_p1, %p800_p2  ;;  %p637_p13 = por %p636_p12, %p635_p11 }
  0x30   : > { %277 = vrot.lane.b32.xlu2 %v248_v2, %s706_s19 }
  0x31   : > { %p633_p7 = pneg %p632_p3 }
  0x33   : > { %p638_p0 = pnand %p637_p13, %p633_p7 }
  0x82   : > { %v275_v8 = vpop.permute.xlu2 %274 }
  0x8a   : > { %v278_v12 = vpop.permute.xlu2 %277 }
  0x8b   : > { %v295_v15 = vsel %vm294_vm2, %v275_v8, %v278_v12 }
  0x99   : > { %v252_v3 = vpop.permute.xlu0 %251 }
  0x9a   : > { %v255_v4 = vsel %vm254_vm0, %v249_v0, %v252_v3 }
  0x9b   : > { %257 = vrot.lane.b32.xlu1 %v255_v4, %s707_s21 }
  0xa1   : > { %v265_v5 = vpop.permute.xlu0 %264 }
  0xa2   : > { %v267_v6 = vsel %vm254_vm0, %v262_v1, %v265_v5 }
  0xa3   : > { %269 = vrot.lane.b32.xlu1 %v267_v6, %s707_s21 }
 0x10d   : > { %v258_v10 = vpop.permute.xlu1 %257 }
 0x10e   : > { %v261_v13 = vsel %vm260_vm1, %v255_v4, %v258_v10 }
 0x10f   : > { %v296_v17 = vmul.f32 %v261_v13, %v248_v2 }
 0x115   : > { %v270_v14 = vpop.permute.xlu1 %269 }
 0x116   : > { %v272_v16 = vsel %vm260_vm1, %v267_v6, %v270_v14 }
 0x117   : > { %v297_v18 = vmul.f32 %v295_v15, %v272_v16 }
 0x119   : > { %v298_v19 = vadd.f32 %v297_v18, %v296_v17 }
 0x11b   : > { %299 = vst [vmem:[%s247_s27] sm:$0xff] %v298_v19 }
 0x11c   : > { %641 = shalt.err (!%p638_p0)
}
 0x11d   : > { %447 = dma.vmem_to_hbm [thread:$0]  (%p800_p2), %s315_s28, 128, %s317_s29, %s301_s15  }
 0x11e PF: > { %s328_s5 = sand.u32 1, %s680_s12   ;;  %p461_p4 = pnand %p425_p8, %p773_p5 }
 0x11f   : > { %s329_s19 = scalar_lea.sflag [#allocation4], %s328_s5 }
 0x120   : > { %p462_p6 = pneg %p461_p4 }
 0x122   : > { %675 = dma.done.wait (%p462_p6), %s329_s19, 128  }
 0x123   : > { %677 = vsyncadd (%p462_p6), %s329_s19, 4294967168  ;;  %s20_s17 = sadd.s32 1, %s700_s17   ;;  %s883_s12 = smov %s684_s13 }
 0x124   : > { %p17_p9 = scmp.ge.s32.totalorder %s20_s17, 4   ;;  %s884_s13 = smov %s688_s14 }
 0x125   : > { %s885_s14 = smov %s810_s23  ;;  %s886_s15 = smov %s696_s16 }
 0x126   : > { %s887_s16 = smov %s889_s7  ;;  %19 = sbr.rel (!%p17_p9) target bundleno = 7 (0x7), region = 87 }
 0x12b   :  { %335 = vsyncpa [#allocation3], 1 }
 0x12c   :  { %337 = vsyncpa [#allocation3 + $0x1], 1 }
 0x12d   :  { %338 = vsyncpa [#allocation6], 1 }
 0x12e   :  { %339 = vsyncpa [#allocation4], 1 }
 0x12f   :  { %341 = vsyncpa [#allocation4 + $0x1], 1 }

</bundles_post_ra>
